<compile_context>
chip_gen: v7x
topology: tpu7x:2x2x1
jax: 0.10.0
libtpu: 0.0.40
codegen_flags: <defaults>
</compile_context>

<pallas_src>
import functools

import jax
import jax.numpy as jnp
from jax.experimental import pallas as pl
from jax.experimental.pallas import tpu as pltpu


def ensemble_kernel(ew_ref, x_ref, w_ref, b_ref, o_ref, *, num_models):
    """Single-step kernel: fold ensemble into one effective linear layer.

    ew_ref : (M,)      f32 SMEM -- ensemble weights (scalars)
    x_ref  : (B, F)    f32 VMEM -- flattened input
    w_ref  : (M, K, F) f32 VMEM -- per-model nn.Linear weights, F on lanes
    b_ref  : (M, 1, K) f32 VMEM -- per-model biases
    o_ref  : (B, K)    f32 VMEM -- final ensemble prediction
    """
    # Weight-side fold (VPU, full aligned vregs; M is tiny & static -> unrolled):
    #   W_eff = sum_m ew[m] * W_m     (K, F)
    #   b_eff = sum_m ew[m] * b_m     (1, K)
    w_eff = ew_ref[0] * w_ref[0]
    b_eff = ew_ref[0] * b_ref[0]
    for m in range(1, num_models):
        w_eff = w_eff + ew_ref[m] * w_ref[m]
        b_eff = b_eff + ew_ref[m] * b_ref[m]

    # One MXU push: contract F (dim 1 of both operands, i.e. trans-B / q@k^T
    # pattern), accumulate in f32.
    logits = jax.lax.dot_general(
        x_ref[...], w_eff,
        dimension_numbers=(((1,), (1,)), ((), ())),
        preferred_element_type=jnp.float32,
    )                                                   # (B, K)

    o_ref[...] = logits + b_eff


def ensemble_forward(x_nchw, stacked_w, stacked_b, ensemble_weights):
    """x_nchw: (B, C, H, W); stacked_w: (M, K, F); stacked_b: (M, 1, K);
    ensemble_weights: (M,).  Returns (B, K) float32."""
    B = x_nchw.shape[0]
    M, K, F = stacked_w.shape

    # torch .view(B, -1): contiguous reshape, free bitcast in XLA.
    x_flat = x_nchw.reshape(B, F)

    kernel = functools.partial(ensemble_kernel, num_models=M)

    flops = 2 * M * K * F + 2 * B * F * K
    bytes_accessed = 4 * (M * K * F + B * F + M * K + M + B * K)

    return pl.pallas_call(
        kernel,
        out_shape=jax.ShapeDtypeStruct((B, K), jnp.float32),
        in_specs=[
            pl.BlockSpec(memory_space=pltpu.MemorySpace.SMEM),  # ensemble_weights
            pl.BlockSpec(memory_space=pltpu.MemorySpace.VMEM),  # x_flat
            pl.BlockSpec(memory_space=pltpu.MemorySpace.VMEM),  # stacked_w
            pl.BlockSpec(memory_space=pltpu.MemorySpace.VMEM),  # stacked_b
        ],
        out_specs=pl.BlockSpec(memory_space=pltpu.MemorySpace.VMEM),
        cost_estimate=pl.CostEstimate(
            flops=flops, transcendentals=0, bytes_accessed=bytes_accessed),
    )(ensemble_weights, x_flat, stacked_w, stacked_b)


if __name__ == "__main__":
    # Small shapes consistent with the module: image batch, 10-class output.
    B, C, H, W = 2, 4, 16, 16
    NUM_CLASSES = 10
    NUM_MODELS = 3
    F = C * H * W

    key = jax.random.PRNGKey(0)
    kx, kw, kb, ke = jax.random.split(key, 4)

    x = jax.random.normal(kx, (B, C, H, W), dtype=jnp.float32)           # NCHW
    # "Model build": weights already in the natural nn.Linear (out, in) layout
    # stacked over models -> (M, K, F); no per-call re-layout needed.
    stacked_w = 0.05 * jax.random.normal(
        kw, (NUM_MODELS, NUM_CLASSES, F), dtype=jnp.float32)
    stacked_b = 0.05 * jax.random.normal(
        kb, (NUM_MODELS, 1, NUM_CLASSES), dtype=jnp.float32)
    # analogous to self.ensemble_weights / optimal_weights (torch.rand init)
    ensemble_weights = jax.random.uniform(ke, (NUM_MODELS,), dtype=jnp.float32)

    out = ensemble_forward(x, stacked_w, stacked_b, ensemble_weights)
    out = jax.block_until_ready(out)

    # Pure-JAX reference of the original (unfolded) forward semantics:
    #   sum_m ew[m] * (flatten(x) @ W_m^T + b_m)
    x_flat = x.reshape(B, F)
    per_model = jnp.stack(
        [(x_flat @ stacked_w[m].T + stacked_b[m]) * ensemble_weights[m]
         for m in range(NUM_MODELS)], axis=0)
    ref = jnp.sum(per_model, axis=0)

    assert out.shape == (B, NUM_CLASSES)
    assert jnp.allclose(out, ref, atol=1e-4, rtol=1e-4)

    print("KERNEL_OK")
</pallas_src>

<mosaic_0001>
module attributes {stable_mosaic.version = 11 : i64} {
  func.func @ensemble_kernel(%arg0: memref<3xf32, #tpu.memory_space<smem>>, %arg1: memref<2x1024xf32, #tpu.memory_space<vmem>>, %arg2: memref<3x10x1024xf32, #tpu.memory_space<vmem>>, %arg3: memref<3x1x10xf32, #tpu.memory_space<vmem>>, %arg4: memref<2x10xf32, #tpu.memory_space<vmem>>) attributes {dimension_semantics = [], scalar_prefetch = 0 : i64, scratch_operands = 0 : i64, tpu.core_type = #tpu.core_type<tc>} {
    %c0 = arith.constant 0 : index
    %0 = memref.load %arg0[%c0] : memref<3xf32, #tpu.memory_space<smem>>
    %c0_0 = arith.constant 0 : index
    %c0_1 = arith.constant 0 : index
    %c0_2 = arith.constant 0 : index
    %1 = vector.load %arg2[%c0_0, %c0_1, %c0_2] : memref<3x10x1024xf32, #tpu.memory_space<vmem>>, vector<1x10x1024xf32>
    %2 = vector.shape_cast %1 : vector<1x10x1024xf32> to vector<10x1024xf32>
    %3 = vector.broadcast %0 : f32 to vector<10x1024xf32>
    %4 = arith.mulf %3, %2 : vector<10x1024xf32>
    %c0_3 = arith.constant 0 : index
    %5 = memref.load %arg0[%c0_3] : memref<3xf32, #tpu.memory_space<smem>>
    %c0_4 = arith.constant 0 : index
    %c0_5 = arith.constant 0 : index
    %c0_6 = arith.constant 0 : index
    %6 = vector.load %arg3[%c0_4, %c0_5, %c0_6] : memref<3x1x10xf32, #tpu.memory_space<vmem>>, vector<1x1x10xf32>
    %7 = vector.shape_cast %6 : vector<1x1x10xf32> to vector<1x10xf32>
    %8 = vector.broadcast %5 : f32 to vector<1x10xf32>
    %9 = arith.mulf %8, %7 : vector<1x10xf32>
    %c1 = arith.constant 1 : index
    %10 = memref.load %arg0[%c1] : memref<3xf32, #tpu.memory_space<smem>>
    %c1_7 = arith.constant 1 : index
    %c0_8 = arith.constant 0 : index
    %c0_9 = arith.constant 0 : index
    %11 = vector.load %arg2[%c1_7, %c0_8, %c0_9] : memref<3x10x1024xf32, #tpu.memory_space<vmem>>, vector<1x10x1024xf32>
    %12 = vector.shape_cast %11 : vector<1x10x1024xf32> to vector<10x1024xf32>
    %13 = vector.broadcast %10 : f32 to vector<10x1024xf32>
    %14 = arith.mulf %13, %12 : vector<10x1024xf32>
    %15 = arith.addf %4, %14 : vector<10x1024xf32>
    %c1_10 = arith.constant 1 : index
    %16 = memref.load %arg0[%c1_10] : memref<3xf32, #tpu.memory_space<smem>>
    %c1_11 = arith.constant 1 : index
    %c0_12 = arith.constant 0 : index
    %c0_13 = arith.constant 0 : index
    %17 = vector.load %arg3[%c1_11, %c0_12, %c0_13] : memref<3x1x10xf32, #tpu.memory_space<vmem>>, vector<1x1x10xf32>
    %18 = vector.shape_cast %17 : vector<1x1x10xf32> to vector<1x10xf32>
    %19 = vector.broadcast %16 : f32 to vector<1x10xf32>
    %20 = arith.mulf %19, %18 : vector<1x10xf32>
    %21 = arith.addf %9, %20 : vector<1x10xf32>
    %c2 = arith.constant 2 : index
    %22 = memref.load %arg0[%c2] : memref<3xf32, #tpu.memory_space<smem>>
    %c2_14 = arith.constant 2 : index
    %c0_15 = arith.constant 0 : index
    %c0_16 = arith.constant 0 : index
    %23 = vector.load %arg2[%c2_14, %c0_15, %c0_16] : memref<3x10x1024xf32, #tpu.memory_space<vmem>>, vector<1x10x1024xf32>
    %24 = vector.shape_cast %23 : vector<1x10x1024xf32> to vector<10x1024xf32>
    %25 = vector.broadcast %22 : f32 to vector<10x1024xf32>
    %26 = arith.mulf %25, %24 : vector<10x1024xf32>
    %27 = arith.addf %15, %26 : vector<10x1024xf32>
    %c2_17 = arith.constant 2 : index
    %28 = memref.load %arg0[%c2_17] : memref<3xf32, #tpu.memory_space<smem>>
    %c2_18 = arith.constant 2 : index
    %c0_19 = arith.constant 0 : index
    %c0_20 = arith.constant 0 : index
    %29 = vector.load %arg3[%c2_18, %c0_19, %c0_20] : memref<3x1x10xf32, #tpu.memory_space<vmem>>, vector<1x1x10xf32>
    %30 = vector.shape_cast %29 : vector<1x1x10xf32> to vector<1x10xf32>
    %31 = vector.broadcast %28 : f32 to vector<1x10xf32>
    %32 = arith.mulf %31, %30 : vector<1x10xf32>
    %33 = arith.addf %21, %32 : vector<1x10xf32>
    %c0_21 = arith.constant 0 : index
    %c0_22 = arith.constant 0 : index
    %34 = vector.load %arg1[%c0_21, %c0_22] : memref<2x1024xf32, #tpu.memory_space<vmem>>, vector<2x1024xf32>
    %cst = arith.constant dense<0.000000e+00> : vector<2x10xf32>
    %35 = tpu.matmul %34, %27, %cst {dimension_numbers = #tpu.dot_dimension_numbers<[1], [1], [0], [0], [0, 0, 1, 0], [], []>} : vector<2x1024xf32>, vector<10x1024xf32>, vector<2x10xf32> -> vector<2x10xf32>
    %36 = vector.broadcast %33 : vector<1x10xf32> to vector<2x10xf32>
    %37 = arith.addf %35, %36 : vector<2x10xf32>
    %c0_23 = arith.constant 0 : index
    %c0_24 = arith.constant 0 : index
    %38 = vector.load %arg4[%c0_23, %c0_24] : memref<2x10xf32, #tpu.memory_space<vmem>>, vector<2x10xf32>
    tpu.vector_store %arg4[%c0_23, %c0_24], %37 {strides = array<i32>} : memref<2x10xf32, #tpu.memory_space<vmem>>, vector<2x10xf32>,
    return
  }
}

</mosaic_0001>

<bundles_post_ra>
// kernel: tpu_custom_call.1
= control target key start
LH: loop header
LB: loop body
LE: loop exit
PB: predicated region body
PF: predicated region fallthrough
CT: control target
= control target key end

     0   :  { %9 = vsyncpa [#allocation4], 0  ;;  %s915_s0 = inlined_call_operand.vmem [shape: f32[3], index: 0, kind: input, shape index: {}]   ;;  %s916_s1 = inlined_call_operand.vmem [shape: f32[2,1024], index: 1, kind: input, shape index: {}]   ;;  %s917_s2 = inlined_call_operand.vmem [shape: f32[3,10,1024], index: 2, kind: input, shape index: {}]   ;;  %s918_s3 = inlined_call_operand.vmem [shape: f32[3,1,10], index: 3, kind: input, shape index: {}]   ;;  %s919_s4 = inlined_call_operand.hbm [shape: f32[2,10], index: 4, kind: output, shape index: {}]  }
   0x1   :  { %10 = vsyncpa [#allocation3], 0  ;;  %s17_s17 = sshll.u32 %s915_s0, 4  ;;  %s18_s17 = int_to_ptr.vmem [resolvable:$true] %s17_s17 }
   0x2   :  { %s589_s18 = scalar_lea.vmem %s18_s17, 16  ;;  %p594_p1 = scmp.lt.s32.totalorder %s18_s17, %s18_s17 }
   0x3   :  { %p590_p0 = scmp.ne.s32.totalorder %s18_s17, %s589_s18  ;;  %p595_p2 = scmp.lt.s32.totalorder %s589_s18, %s589_s18 }
   0x5   :  { %p596_p3 = por %p595_p2, %p594_p1 }
   0x7   :  { %p597_p4 = pnand %p596_p3, %p590_p0 }
   0x9   :  { %600 = shalt.err (!%p597_p4)
}
   0xa   :  { %s627_s19 = smov [#allocation2]  }
   0xb   :  { %20 = dma.vmem_to_smem %s18_s17, 16, %s627_s19, [#allocation4]  }
   0xc   :  { %623 = dma.done.wait [#allocation4], 16  }
   0xd   :  { %624 = vsyncadd [#allocation4], 4294967280 }
   0xe   :  { %30 = sfence }
   0xf   :  { %s31_s20 = sld [smem:[#allocation2]]  ;;  %s526_s21 = sld [smem:[#allocation2 + $0x1]]  ;;  %v180_v0 = vlaneseq  ;;  %v41_v1 = vld [vmem:[%s917_s2 + $0x48] sm:$0x3]  ;;  %v628_v13 = vmov 1983009808  }
  0x10   :  { %s544_s22 = sld [smem:[#allocation2 + $0x2]]  ;;  %v33_v2 = vld [vmem:[%s917_s2 + $0x8] sm:$0xff]  ;;  %v692_v14 = vunpack.c.l.s4 %v628_v13  ;;  %v32_v25 = vld [vmem:[%s917_s2] sm:$0xff]  ;;  %vm509_vm0 = vcmask 74752  }
  0x11   :  { %v528_v3 = vld [vmem:[%s917_s2 + $0x88] sm:$0xff]  ;;  %v690_v12 = vshrl.u32 %v180_v0, 7  ;;  %v40_v26 = vld [vmem:[%s917_s2 + $0x40] sm:$0x3] }
  0x12   :  { %v536_v4 = vld [vmem:[%s917_s2 + $0xc8] sm:$0x3]  ;;  %v527_v31 = vld [vmem:[%s917_s2 + $0x80] sm:$0xff] }
  0x13   :  { %v546_v5 = vld [vmem:[%s917_s2 + $0x108] sm:$0xff]  ;;  %v535_v32 = vld [vmem:[%s917_s2 + $0xc0] sm:$0x3] }
  0x14   :  { %v554_v6 = vld [vmem:[%s917_s2 + $0x148] sm:$0x3]  ;;  %v545_v37 = vld [vmem:[%s917_s2 + $0x100] sm:$0xff] }
  0x15   :  { %v37_v7 = vld [vmem:[%s917_s2 + $0x28] sm:$0xff]  ;;  %v679_v8 = vstv %s31_s20  ;;  %v696_v17 = vstv %s526_s21  ;;  %v553_v38 = vld [vmem:[%s917_s2 + $0x140] sm:$0x3] }
  0x16   :  { %v45_v9 = vld [vmem:[%s917_s2 + $0x68] sm:$0x3]  ;;  %v50_v15 = vmul.f32 %v679_v8, %v33_v2  ;;  %v58_v16 = vmul.f32 %v679_v8, %v41_v1  ;;  %v698_v18 = vstv %s544_s22  ;;  %v87_v21 = vmul.f32 %v528_v3, %v696_v17  ;;  %v36_v43 = vld [vmem:[%s917_s2 + $0x20] sm:$0xff]  ;;  %v35_v2 = vld [vmem:[%s917_s2 + $0x18] sm:$0xff] }
  0x17   :  { %v532_v10 = vld [vmem:[%s917_s2 + $0xa8] sm:$0xff]  ;;  %v95_v22 = vmul.f32 %v536_v4, %v696_v17  ;;  %v142_v23 = vmul.f32 %v546_v5, %v698_v18  ;;  %v150_v24 = vmul.f32 %v554_v6, %v698_v18  ;;  %v54_v27 = vmul.f32 %v679_v8, %v37_v7  ;;  %v44_v48 = vld [vmem:[%s917_s2 + $0x60] sm:$0x3]  ;;  %v43_v3 = vld [vmem:[%s917_s2 + $0x58] sm:$0x3] }
  0x18   :  { %v540_v11 = vld [vmem:[%s917_s2 + $0xe8] sm:$0x3]  ;;  %v62_v28 = vmul.f32 %v679_v8, %v45_v9  ;;  %v91_v29 = vmul.f32 %v532_v10, %v696_v17  ;;  %v103_v33 = vadd.f32 %v87_v21, %v50_v15  ;;  %v49_v41 = vmul.f32 %v679_v8, %v32_v25  ;;  %v531_v49 = vld [vmem:[%s917_s2 + $0xa0] sm:$0xff]  ;;  %v530_v10 = vld [vmem:[%s917_s2 + $0x98] sm:$0xff] }
  0x19   :  { %v550_v19 = vld [vmem:[%s917_s2 + $0x128] sm:$0xff]  ;;  %v99_v30 = vmul.f32 %v540_v11, %v696_v17  ;;  %v111_v34 = vadd.f32 %v95_v22, %v58_v16  ;;  %v57_v42 = vmul.f32 %v679_v8, %v40_v26  ;;  %v86_v46 = vmul.f32 %v527_v31, %v696_v17  ;;  %v539_v50 = vld [vmem:[%s917_s2 + $0xe0] sm:$0x3]  ;;  %v538_v11 = vld [vmem:[%s917_s2 + $0xd8] sm:$0x3] }
  0x1a   :  { %v558_v20 = vld [vmem:[%s917_s2 + $0x168] sm:$0x3]  ;;  %v146_v35 = vmul.f32 %v550_v19, %v698_v18  ;;  %v107_v39 = vadd.f32 %v91_v29, %v54_v27  ;;  %v158_v44 = vadd.f32 %v142_v23, %v103_v33  ;;  %v94_v47 = vmul.f32 %v535_v32, %v696_v17  ;;  %v549_v55 = vld [vmem:[%s917_s2 + $0x120] sm:$0xff]  ;;  %v556_v21 = vld [vmem:[%s917_s2 + $0x158] sm:$0x3] }
  0x1b   :  { %v154_v36 = vmul.f32 %v558_v20, %v698_v18  ;;  %v115_v40 = vadd.f32 %v99_v30, %v62_v28  ;;  %v166_v45 = vadd.f32 %v150_v24, %v111_v34  ;;  %v141_v53 = vmul.f32 %v545_v37, %v698_v18  ;;  %v557_v56 = vld [vmem:[%s917_s2 + $0x160] sm:$0x3]  ;;  %v778_v9 = vld [vmem:[%s916_s1 + $0x8] sm:$0xff]  ;;  %v548_v20 = vld [vmem:[%s917_s2 + $0x118] sm:$0xff] }
  0x1c   :  { %v162_v51 = vadd.f32 %v146_v35, %v107_v39  ;;  %v149_v54 = vmul.f32 %v553_v38, %v698_v18  ;;  %v102_v58 = vadd.f32 %v86_v46, %v49_v41  ;;  %v110_v59 = vadd.f32 %v94_v47, %v57_v42  ;;  %v765_v1 = vld [vmem:[%s916_s1] sm:$0xff]  ;;  %v39_v22 = vld [vmem:[%s917_s2 + $0x38] sm:$0xff]  ;;  %v34_v47 = vld [vmem:[%s917_s2 + $0x10] sm:$0xff] }
  0x1d   :  { %v170_v52 = vadd.f32 %v154_v36, %v115_v40  ;;  %v562_v57 = vpack.c.bf16 %v166_v45, %v158_v44  ;;  %v53_v60 = vmul.f32 %v679_v8, %v36_v43  ;;  %v61_v62 = vmul.f32 %v679_v8, %v44_v48  ;;  %v47_v30 = vld [vmem:[%s917_s2 + $0x78] sm:$0x3]  ;;  %v42_v48 = vld [vmem:[%s917_s2 + $0x50] sm:$0x3] }
  0x1e   :  { %v90_v63 = vmul.f32 %v531_v49, %v696_v17  ;;  %v98_v0 = vmul.f32 %v539_v50, %v696_v17  ;;  %v157_v4 = vadd.f32 %v141_v53, %v102_v58  ;;  %v165_v5 = vadd.f32 %v149_v54, %v110_v59  ;;  %v534_v31 = vld [vmem:[%s917_s2 + $0xb8] sm:$0xff]  ;;  %v529_v49 = vld [vmem:[%s917_s2 + $0x90] sm:$0xff] }
  0x1f   :  { %v570_v61 = vpack.c.bf16 %v170_v52, %v162_v51  ;;  %563 = vmatprep.subr.bf16.mxu1 %v562_v57  ;;  %v145_v6 = vmul.f32 %v549_v55, %v698_v18  ;;  %v153_v7 = vmul.f32 %v557_v56, %v698_v18  ;;  %v187_v16 = vcombine.high %v765_v1, %v765_v1  ;;  %v542_v32 = vld [vmem:[%s917_s2 + $0xf8] sm:$0x3]  ;;  %v537_v54 = vld [vmem:[%s917_s2 + $0xd0] sm:$0x3] }
  0x20   :  { %v106_v13 = vadd.f32 %v90_v63, %v53_v60  ;;  %v114_v15 = vadd.f32 %v98_v0, %v61_v62  ;;  %v190_v19 = vunpack.c.0.s8 %v692_v14  ;;  %v564_v23 = vpack.c.bf16 %v165_v5, %v157_v4  ;;  %v552_v37 = vld [vmem:[%s917_s2 + $0x138] sm:$0xff]  ;;  %v547_v59 = vld [vmem:[%s917_s2 + $0x110] sm:$0xff] }
  0x21   :  { %571 = vmatprep.subr.bf16.mxu0 %v570_v61  ;;  %v204_v24 = vcombine.high %v778_v9, %v778_v9  ;;  %v52_v25 = vmul.f32 %v679_v8, %v35_v2  ;;  %v60_v14 = vmul.f32 %v679_v8, %v43_v3  ;;  %v89_v29 = vmul.f32 %v530_v10, %v696_v17  ;;  %v560_v42 = vld [vmem:[%s917_s2 + $0x178] sm:$0x3]  ;;  %v555_v60 = vld [vmem:[%s917_s2 + $0x150] sm:$0x3] }
  0x22   :  { %v161_v26 = vadd.f32 %v145_v6, %v106_v13  ;;  %v169_v27 = vadd.f32 %v153_v7, %v114_v15  ;;  %v803_v28 = vsub.s32 %v190_v19, %v690_v12  ;;  %565 = vmatpush1.bf16.xpose.msra.mxu1 %v564_v23  ;;  %v97_v33 = vmul.f32 %v538_v11, %v696_v17  ;;  %v38_v61 = vld [vmem:[%s917_s2 + $0x30] sm:$0xff] }
  0x23   :  { %v144_v34 = vmul.f32 %v548_v20, %v698_v18  ;;  %v152_v35 = vmul.f32 %v556_v21, %v698_v18  ;;  %v56_v36 = vmul.f32 %v679_v8, %v39_v22  ;;  %v105_v41 = vadd.f32 %v89_v29, %v52_v25  ;;  %v46_v2 = vld [vmem:[%s917_s2 + $0x70] sm:$0x3] }
  0x24   :  { %v572_v38 = vpack.c.bf16 %v169_v27, %v161_v26  ;;  %v194_v39 = vrot.slane %v765_v1, %v803_v28  ;;  %v211_v40 = vrot.slane %v778_v9, %v803_v28  ;;  %v113_v43 = vadd.f32 %v97_v33, %v60_v14  ;;  %v533_v3 = vld [vmem:[%s917_s2 + $0xb0] sm:$0xff]  ;;  %v65_v26 = vld [vmem:[%s918_s3] sm:$0x1]  ;;  %v543_v27 = vld [vmem:[%s918_s3 + $0x1] sm:$0x1] }
  0x25   :  { %v64_v44 = vmul.f32 %v679_v8, %v47_v30  ;;  %v93_v45 = vmul.f32 %v534_v31, %v696_v17  ;;  %v101_v46 = vmul.f32 %v542_v32, %v696_v17  ;;  %v160_v52 = vadd.f32 %v144_v34, %v105_v41  ;;  %v541_v10 = vld [vmem:[%s917_s2 + $0xf0] sm:$0x3]  ;;  %v561_v33 = vld [vmem:[%s918_s3 + $0x2] sm:$0x1]  ;;  %s629_s3 = smov [#allocation5]  }
  0x26   :  { %573 = vmatpush1.bf16.xpose.msra.mxu0 %v572_v38  ;;  %v202_v50 = vcombine.high %v194_v39, %v194_v39  ;;  %v219_v51 = vcombine.high %v211_v40, %v211_v40  ;;  %v148_v53 = vmul.f32 %v552_v37, %v698_v18  ;;  %v168_v55 = vadd.f32 %v152_v35, %v113_v43  ;;  %v551_v11 = vld [vmem:[%s917_s2 + $0x130] sm:$0xff]  ;;  %s517_s18 = sshll.u32 %s629_s3, 4  ;;  %s518_s18 = int_to_ptr.vmem [resolvable:$true] %s517_s18 }
  0x27   :  { %v109_v56 = vadd.f32 %v93_v45, %v56_v36  ;;  %v117_v57 = vadd.f32 %v101_v46, %v64_v44  ;;  %v156_v58 = vmul.f32 %v560_v42, %v698_v18  ;;  %v51_v62 = vmul.f32 %v679_v8, %v34_v47  ;;  %v559_v13 = vld [vmem:[%s917_s2 + $0x170] sm:$0x3]  ;;  %s601_s19 = scalar_lea.vmem %s518_s18, 32  ;;  %p606_p6 = scmp.lt.s32.totalorder %s518_s18, %s518_s18 }
  0x28   :  { %293 = vmatprep.mubr.f32.mxu1 %v202_v50  ;;  %433 = vmatprep.mubr.f32.mxu0 %v219_v51  ;;  %v59_v63 = vmul.f32 %v679_v8, %v42_v48  ;;  %v88_v0 = vmul.f32 %v529_v49, %v696_v17  ;;  %v566_v4 = vpack.c.bf16 %v168_v55, %v160_v52  ;;  %v182_v1 = vsub.s32 0, %v690_v12  ;;  %p602_p5 = scmp.ne.s32.totalorder %s518_s18, %s601_s19  ;;  %p607_p7 = scmp.lt.s32.totalorder %s601_s19, %s601_s19 }
  0x29   :  { %v164_v5 = vadd.f32 %v148_v53, %v109_v56  ;;  %v172_v6 = vadd.f32 %v156_v58, %v117_v57  ;;  %v96_v7 = vmul.f32 %v537_v54, %v696_v17  ;;  %294 = vmatmul.mubr.f32.vlgmr.msra.gmra.mrb[0].mxu1 %v194_v39  ;;  %v143_v19 = vmul.f32 %v547_v59, %v698_v18 }
  0x2a   :  { %v104_v15 = vadd.f32 %v88_v0, %v51_v62  ;;  %v151_v20 = vmul.f32 %v555_v60, %v698_v18  ;;  %v55_v21 = vmul.f32 %v679_v8, %v38_v61  ;;  %567 = vmatprep.subr.bf16.mxu1 %v566_v4  ;;  %v63_v25 = vmul.f32 %v679_v8, %v46_v2  ;;  %p608_p8 = por %p607_p7, %p606_p6 }
  0x2b   :  { %v574_v22 = vpack.c.bf16 %v172_v6, %v164_v5  ;;  %v112_v23 = vadd.f32 %v96_v7, %v59_v63  ;;  %v92_v14 = vmul.f32 %v533_v3, %v696_v17  ;;  %v100_v30 = vmul.f32 %v541_v10, %v696_v17 }
  0x2c   :  { %v159_v29 = vadd.f32 %v143_v19, %v104_v15  ;;  %v147_v31 = vmul.f32 %v551_v11, %v698_v18  ;;  %v155_v32 = vmul.f32 %v559_v13, %v698_v18  ;;  %v201_v36 = vrot.slane %v187_v16, %v803_v28  ;;  %p609_p9 = pnand %p608_p8, %p602_p5 }
  0x2d   :  { %434 = vmatmul.mubr.f32.vlgmr.msra.gmra.mrb[0].mxu0 %v211_v40  ;;  %575 = vmatprep.subr.bf16.mxu0 %v574_v22  ;;  %v167_v34 = vadd.f32 %v151_v20, %v112_v23  ;;  %v108_v35 = vadd.f32 %v92_v14, %v55_v21  ;;  %v116_v37 = vadd.f32 %v100_v30, %v63_v25 }
  0x2e   :  { %v218_v38 = vrot.slane %v204_v24, %v803_v28  ;;  %v66_v39 = vmul.f32 %v65_v26, %v679_v8  ;;  %v120_v41 = vmul.f32 %v543_v27, %v696_v17  ;;  %v203_v43 = vcombine.high %v201_v36, %v201_v36 }
  0x2f   :  { %v568_v42 = vpack.c.bf16 %v167_v34, %v159_v29  ;;  %v163_v40 = vadd.f32 %v147_v31, %v108_v35  ;;  %v175_v44 = vmul.f32 %v561_v33, %v698_v18  ;;  %v171_v45 = vadd.f32 %v155_v32, %v116_v37 }
  0x30   :  { %v220_v46 = vcombine.high %v218_v38, %v218_v38  ;;  %v121_v47 = vadd.f32 %v120_v41, %v66_v39  ;;  %363 = vmatprep.mubr.f32.mxu1 %v203_v43 }
  0x31   :  { %569 = vmatpush1.bf16.xpose.msra.mxu1 %v568_v42  ;;  %v576_v16 = vpack.c.bf16 %v171_v45, %v163_v40 }
  0x32   :  { %503 = vmatprep.mubr.f32.mxu0 %v220_v46  ;;  %v176_v9 = vadd.f32 %v175_v44, %v121_v47 }
  0x33   :  { %577 = vmatpush1.bf16.xpose.msra.mxu0 %v576_v16 }
  0x34   :  { %v183_v24 = vrot.slane %v176_v9, %v182_v1 }
  0x38   :  { %364 = vmatmul.mubr.f32.vlgmr.msra.gmra.mrb[0].mxu1 %v201_v36 }
  0x3a   :  { %504 = vmatmul.mubr.f32.vlgmr.msra.gmra.mrb[0].mxu0 %v218_v38 }
 0x10b   :  { %v365_v8 = vpop.f32.mrb[0].mxu1 }
 0x10c   :  { %v578_v17 = vadd.f32 %v365_v8, %v183_v24  ;;  %v367_v28 = vpop.f32.mrb[1].mxu1 }
 0x10d   :  { %v505_v18 = vpop.f32.mrb[0].mxu0 }
 0x10e   :  { %v579_v48 = vadd.f32 %v578_v17, %v505_v18  ;;  %v507_v49 = vpop.f32.mrb[1].mxu0 }
 0x110   :  { %510 = vst.msk [vmem:[#allocation5] sm:$0x3] %vm509_vm0, %v579_v48 }
 0x111   :  { %612 = shalt.err (!%p609_p9)
}
 0x112   :  { %s613_s22 = scalar_lea.hbm %s919_s4, 32 }
 0x113   :  { %p614_p10 = scmp.ne.s32.totalorder %s919_s4, %s613_s22  ;;  %p617_p11 = scmp.lt.u32.totalorder %s613_s22, %s919_s4 }
 0x115   :  { %p619_p12 = pnand %p617_p11, %p614_p10 }
 0x117   :  { %622 = shalt.err (!%p619_p12)
}
 0x118   :  { %520 = dma.vmem_to_hbm [thread:$0]  %s518_s18, 32, %s919_s4, [#allocation3]  }
 0x119   :  { %625 = dma.done.wait [#allocation3], 32  }
 0x11a   :  { %626 = vsyncadd [#allocation3], 4294967264 }
 0x11b   :  { %524 = vsyncpa [#allocation3], 1 }
 0x11c   :  { %525 = vsyncpa [#allocation4], 1 }

</bundles_post_ra>
